<compile_context>
chip_gen: v7x
topology: tpu7x:2x2x1
jax: 0.10.0
libtpu: 0.0.40
codegen_flags: <defaults>
</compile_context>

<pallas_src>
import functools

import jax
import jax.numpy as jnp
from jax.experimental import pallas as pl
from jax.experimental.pallas import tpu as pltpu


def mlp_kernel(x_ref, w1_ref, b1_ref, w2t_ref, b2_ref, w3_ref, b3_ref, o_ref):
    # Feature-major layout: features on sublanes, batch tile on lanes.
    x = x_ref[...]                                              # (1, TN)

    # Layer 1 (1 -> 64): K=1 matmul == outer product -> pure VPU broadcast.
    h1 = jnp.maximum(w1_ref[...] * x + b1_ref[...], 0.0)        # (64, TN)

    # Layer 2 (64 -> 128): the one real matmul, M=128 K=64 on the MXU,
    # lane-dense output.
    h2 = jnp.dot(w2t_ref[...], h1, preferred_element_type=jnp.float32)
    h2 = jnp.maximum(h2 + b2_ref[...], 0.0)                     # (128, TN)

    # Layer 3 (128 -> 1): N=1 matmul == weighted feature reduction -> VPU mul
    # + sublane-axis sum (XLU); the (1, TN) store stays lane-dense.
    out = jnp.sum(w3_ref[...] * h2, axis=0, keepdims=True) + b3_ref[...]
    o_ref[...] = out.astype(o_ref.dtype)


def _round_up(x, m):
    return (x + m - 1) // m * m


@functools.partial(jax.jit, static_argnames=("tile_n",))
def net_forward(x, params, *, tile_n=2048):
    """x: (N, 1) float32 -> (N, 1) float32 (same semantics as Net.forward)."""
    w1, b1, w2, b2, w3, b3 = params
    n = x.shape[0]

    # Feature-major operands (batch on the lane axis).
    xt = x.reshape(n, 1).T            # (1, N)
    w1c = w1.reshape(1, 64).T         # (64, 1)
    b1c = b1.reshape(1, 64).T         # (64, 1)
    w2t = w2.T                        # (128, 64)  -> layer 2 is w2t @ h1
    b2c = b2.reshape(1, 128).T        # (128, 1)
    w3c = w3.reshape(128, 1)          # (128, 1)
    b3s = b3.reshape(1, 1)            # (1, 1)

    # Pad batch to full 128-lane vregs.  Tiny batches stay a single grid step;
    # large batches get a pipelined, megacore-parallel 1-D grid over N.
    n_pad = _round_up(max(n, 1), 128)
    if n_pad <= tile_n:
        tile = n_pad
    else:
        tile = tile_n
        n_pad = _round_up(n_pad, tile)
    xp = jnp.pad(xt, ((0, 0), (0, n_pad - n)))

    grid = (n_pad // tile,)
    const = lambda i: (0, 0)   # same block every step -> stays VMEM-resident

    out = pl.pallas_call(
        mlp_kernel,
        out_shape=jax.ShapeDtypeStruct((1, n_pad), jnp.float32),
        grid_spec=pltpu.PrefetchScalarGridSpec(
            num_scalar_prefetch=0,
            grid=grid,
            in_specs=[
                pl.BlockSpec((1, tile), lambda i: (0, i)),   # x batch tile
                pl.BlockSpec((64, 1), const),                # w1 column
                pl.BlockSpec((64, 1), const),                # b1
                pl.BlockSpec((128, 64), const),              # W2^T
                pl.BlockSpec((128, 1), const),               # b2
                pl.BlockSpec((128, 1), const),               # w3 column
                pl.BlockSpec((1, 1), const),                 # b3
            ],
            out_specs=pl.BlockSpec((1, tile), lambda i: (0, i)),
        ),
        compiler_params=pltpu.CompilerParams(
            dimension_semantics=("parallel",),
        ),
    )(xp, w1c, b1c, w2t, b2c, w3c, b3s)

    return out[:, :n].T               # back to (N, 1)


def init_params(key):
    """Deterministic init mimicking PyTorch Linear default U(-1/sqrt(fan_in), +)."""
    def linear(key, fan_in, fan_out):
        kw, kb = jax.random.split(key)
        bound = 1.0 / jnp.sqrt(jnp.float32(fan_in))
        w = jax.random.uniform(kw, (fan_in, fan_out), jnp.float32, -bound, bound)
        b = jax.random.uniform(kb, (1, fan_out), jnp.float32, -bound, bound)
        return w, b

    k1, k2, k3 = jax.random.split(key, 3)
    w1, b1 = linear(k1, 1, 64)
    w2, b2 = linear(k2, 64, 128)
    w3, b3 = linear(k3, 128, 1)
    return (w1, b1, w2, b2, w3, b3)


def reference_forward(x, params):
    """Pure-JAX reference of Net.forward (Linear->ReLU->Linear->ReLU->Linear).

    The fan-in-1 / fan-out-1 layers are written as mathematically identical
    broadcast / reduce ops (x @ w1 == x * w1[0], h2 @ w3 == sum(h2 * w3[:,0]))
    so the reference is exact f32 and independent of how degenerate K=1 / N=1
    matmuls are lowered.
    """
    w1, b1, w2, b2, w3, b3 = params
    h1 = jnp.maximum(x * w1[0] + b1, 0.0)                       # == x @ w1 + b1
    h2 = jnp.maximum(h1 @ w2 + b2, 0.0)
    out = jnp.sum(h2 * w3[:, 0], axis=-1, keepdims=True) + b3   # == h2 @ w3 + b3
    return out


if __name__ == "__main__":
    key = jax.random.PRNGKey(0)
    params = init_params(key)

    # Spec input: torch.linspace(-1, 1, 35) fed as (35, 1) -> single-step grid.
    x_small = jnp.linspace(-1.0, 1.0, 35, dtype=jnp.float32).reshape(-1, 1)
    out_small = jax.block_until_ready(net_forward(x_small, params))
    ref_small = reference_forward(x_small, params)
    assert out_small.shape == (35, 1)
    assert jnp.allclose(out_small, ref_small, atol=1e-4, rtol=1e-4)

    # Larger batch: exercises the multi-step, megacore-parallel grid path.
    x_big = jax.random.uniform(jax.random.PRNGKey(1), (5000, 1), jnp.float32,
                               -1.0, 1.0)
    out_big = jax.block_until_ready(net_forward(x_big, params))
    ref_big = reference_forward(x_big, params)
    assert out_big.shape == (5000, 1)
    assert jnp.allclose(out_big, ref_big, atol=1e-4, rtol=1e-4)

    print("KERNEL_OK")
</pallas_src>

<mosaic_0001>
module attributes {stable_mosaic.version = 11 : i64} {
  func.func @mlp_kernel(%arg0: i32, %arg1: memref<1x128xf32, #tpu.memory_space<vmem>>, %arg2: memref<64x1xf32, #tpu.memory_space<vmem>>, %arg3: memref<64x1xf32, #tpu.memory_space<vmem>>, %arg4: memref<128x64xf32, #tpu.memory_space<vmem>>, %arg5: memref<128x1xf32, #tpu.memory_space<vmem>>, %arg6: memref<128x1xf32, #tpu.memory_space<vmem>>, %arg7: memref<1x1xf32, #tpu.memory_space<vmem>>, %arg8: memref<1x128xf32, #tpu.memory_space<vmem>>) attributes {dimension_semantics = [#tpu.dimension_semantics<parallel>], iteration_bounds = array<i64: 1>, scalar_prefetch = 0 : i64, scratch_operands = 0 : i64, tpu.core_type = #tpu.core_type<tc>, window_params = [{transform_indices = @transform_0, window_bounds = array<i64: 1, 128>}, {pipeline_mode = #tpu.pipeline_mode<synchronous>, transform_indices = @transform_1, window_bounds = array<i64: 64, 1>}, {pipeline_mode = #tpu.pipeline_mode<synchronous>, transform_indices = @transform_2, window_bounds = array<i64: 64, 1>}, {pipeline_mode = #tpu.pipeline_mode<synchronous>, transform_indices = @transform_3, window_bounds = array<i64: 128, 64>}, {pipeline_mode = #tpu.pipeline_mode<synchronous>, transform_indices = @transform_4, window_bounds = array<i64: 128, 1>}, {pipeline_mode = #tpu.pipeline_mode<synchronous>, transform_indices = @transform_5, window_bounds = array<i64: 128, 1>}, {pipeline_mode = #tpu.pipeline_mode<synchronous>, transform_indices = @transform_6, window_bounds = array<i64: 1, 1>}, {transform_indices = @transform_7, window_bounds = array<i64: 1, 128>}]} {
    %c0 = arith.constant 0 : index
    %c0_0 = arith.constant 0 : index
    %0 = vector.load %arg1[%c0, %c0_0] : memref<1x128xf32, #tpu.memory_space<vmem>>, vector<1x128xf32>
    %c0_1 = arith.constant 0 : index
    %c0_2 = arith.constant 0 : index
    %1 = vector.load %arg2[%c0_1, %c0_2] : memref<64x1xf32, #tpu.memory_space<vmem>>, vector<64x1xf32>
    %2 = vector.broadcast %1 : vector<64x1xf32> to vector<64x128xf32>
    %3 = vector.broadcast %0 : vector<1x128xf32> to vector<64x128xf32>
    %4 = arith.mulf %2, %3 : vector<64x128xf32>
    %c0_3 = arith.constant 0 : index
    %c0_4 = arith.constant 0 : index
    %5 = vector.load %arg3[%c0_3, %c0_4] : memref<64x1xf32, #tpu.memory_space<vmem>>, vector<64x1xf32>
    %6 = vector.broadcast %5 : vector<64x1xf32> to vector<64x128xf32>
    %7 = arith.addf %4, %6 : vector<64x128xf32>
    %cst = arith.constant 0.000000e+00 : f32
    %8 = vector.broadcast %cst : f32 to vector<64x128xf32>
    %9 = arith.maximumf %7, %8 : vector<64x128xf32>
    %c0_5 = arith.constant 0 : index
    %c0_6 = arith.constant 0 : index
    %10 = vector.load %arg4[%c0_5, %c0_6] : memref<128x64xf32, #tpu.memory_space<vmem>>, vector<128x64xf32>
    %cst_7 = arith.constant dense<0.000000e+00> : vector<128x128xf32>
    %11 = tpu.matmul %10, %9, %cst_7 {dimension_numbers = #tpu.dot_dimension_numbers<[1], [0], [0], [1], [0, 0, 1, 1], [], []>} : vector<128x64xf32>, vector<64x128xf32>, vector<128x128xf32> -> vector<128x128xf32>
    %c0_8 = arith.constant 0 : index
    %c0_9 = arith.constant 0 : index
    %12 = vector.load %arg5[%c0_8, %c0_9] : memref<128x1xf32, #tpu.memory_space<vmem>>, vector<128x1xf32>
    %13 = vector.broadcast %12 : vector<128x1xf32> to vector<128x128xf32>
    %14 = arith.addf %11, %13 : vector<128x128xf32>
    %cst_10 = arith.constant 0.000000e+00 : f32
    %15 = vector.broadcast %cst_10 : f32 to vector<128x128xf32>
    %16 = arith.maximumf %14, %15 : vector<128x128xf32>
    %c0_11 = arith.constant 0 : index
    %c0_12 = arith.constant 0 : index
    %17 = vector.load %arg6[%c0_11, %c0_12] : memref<128x1xf32, #tpu.memory_space<vmem>>, vector<128x1xf32>
    %18 = vector.broadcast %17 : vector<128x1xf32> to vector<128x128xf32>
    %19 = arith.mulf %18, %16 : vector<128x128xf32>
    %cst_13 = arith.constant dense<0.000000e+00> : vector<128xf32>
    %20 = vector.multi_reduction <add>, %19, %cst_13 [0] : vector<128x128xf32> to vector<128xf32>
    %21 = vector.shape_cast %20 : vector<128xf32> to vector<1x128xf32>
    %c0_14 = arith.constant 0 : index
    %c0_15 = arith.constant 0 : index
    %22 = vector.load %arg7[%c0_14, %c0_15] : memref<1x1xf32, #tpu.memory_space<vmem>>, vector<1x1xf32>
    %23 = vector.broadcast %22 : vector<1x1xf32> to vector<1x128xf32>
    %24 = arith.addf %21, %23 : vector<1x128xf32>
    %c0_16 = arith.constant 0 : index
    %c0_17 = arith.constant 0 : index
    %25 = vector.load %arg8[%c0_16, %c0_17] : memref<1x128xf32, #tpu.memory_space<vmem>>, vector<1x128xf32>
    tpu.vector_store %arg8[%c0_16, %c0_17], %24 {strides = array<i32>} : memref<1x128xf32, #tpu.memory_space<vmem>>, vector<1x128xf32>,
    return
  }
  func.func @transform_0(%arg0: i32) -> (i32, i32) {
    %c0_i32 = arith.constant 0 : i32
    %c0_i32_0 = arith.constant 0 : i32
    return %c0_i32, %arg0 : i32, i32
  }
  func.func @transform_1(%arg0: i32) -> (i32, i32) {
    %c0_i32 = arith.constant 0 : i32
    %c0_i32_0 = arith.constant 0 : i32
    %c0_i32_1 = arith.constant 0 : i32
    return %c0_i32, %c0_i32_0 : i32, i32
  }
  func.func @transform_2(%arg0: i32) -> (i32, i32) {
    %c0_i32 = arith.constant 0 : i32
    %c0_i32_0 = arith.constant 0 : i32
    %c0_i32_1 = arith.constant 0 : i32
    return %c0_i32, %c0_i32_0 : i32, i32
  }
  func.func @transform_3(%arg0: i32) -> (i32, i32) {
    %c0_i32 = arith.constant 0 : i32
    %c0_i32_0 = arith.constant 0 : i32
    %c0_i32_1 = arith.constant 0 : i32
    return %c0_i32, %c0_i32_0 : i32, i32
  }
  func.func @transform_4(%arg0: i32) -> (i32, i32) {
    %c0_i32 = arith.constant 0 : i32
    %c0_i32_0 = arith.constant 0 : i32
    %c0_i32_1 = arith.constant 0 : i32
    return %c0_i32, %c0_i32_0 : i32, i32
  }
  func.func @transform_5(%arg0: i32) -> (i32, i32) {
    %c0_i32 = arith.constant 0 : i32
    %c0_i32_0 = arith.constant 0 : i32
    %c0_i32_1 = arith.constant 0 : i32
    return %c0_i32, %c0_i32_0 : i32, i32
  }
  func.func @transform_6(%arg0: i32) -> (i32, i32) {
    %c0_i32 = arith.constant 0 : i32
    %c0_i32_0 = arith.constant 0 : i32
    %c0_i32_1 = arith.constant 0 : i32
    return %c0_i32, %c0_i32_0 : i32, i32
  }
  func.func @transform_7(%arg0: i32) -> (i32, i32) {
    %c0_i32 = arith.constant 0 : i32
    %c0_i32_0 = arith.constant 0 : i32
    return %c0_i32, %arg0 : i32, i32
  }
}

</mosaic_0001>

<bundles_post_ra>
// kernel: net_forward.1
= control target key start
LH: loop header
LB: loop body
LE: loop exit
PB: predicated region body
PF: predicated region fallthrough
CT: control target
= control target key end

     0   :  { %v734_v0 = vmov 0   ;;  %vm267_vm0 = vcmask 523264   ;;  %s992_s2 = inlined_call_operand.vmem [shape: f32[64,1], index: 2, kind: input, shape index: {}]   ;;  %s993_s1 = inlined_call_operand.vmem [shape: f32[64,1], index: 1, kind: input, shape index: {}]   ;;  %s994_s6 = inlined_call_operand.<no memory space> [shape: f32[1,1], index: 6, kind: input, shape index: {}]   ;;  %s995_s4 = inlined_call_operand.vmem [shape: f32[128,1], index: 4, kind: input, shape index: {}]   ;;  %s996_s3 = inlined_call_operand.vmem [shape: f32[128,64], index: 3, kind: input, shape index: {}]   ;;  %s997_s5 = inlined_call_operand.vmem [shape: f32[128,1], index: 5, kind: input, shape index: {}]   ;;  %s998_s0 = inlined_call_operand.vmem [shape: f32[1,128], index: 0, kind: input, shape index: {}]   ;;  %s999_s7 = inlined_call_operand.vmem [shape: f32[1,128], index: 7, kind: output, shape index: {}]  }
   0x1   :  { %733 = vset.pattern.permute.xlu1 %v734_v0  ;;  %732 = vset.pattern.permute.xlu0 %v734_v0  ;;  %v91_v1 = vld [vmem:[%s992_s2] sm:$0xff]  ;;  %v12_v3 = vstv %s994_s6  ;;  %v92_v4 = vld [vmem:[%s992_s2 + $0x8] sm:$0xff]  ;;  %v32_v6 = vld [vmem:[%s993_s1 + $0x18] sm:$0xff] }
   0x2   :  { %v29_v2 = vld [vmem:[%s993_s1] sm:$0xff]  ;;  %101 = vperm.xlu1 %733, %v91_v1   ;;  %13 = vst [vmem:[#allocation2] sm:$0x1] %v12_v3  ;;  %v30_v5 = vld [vmem:[%s993_s1 + $0x8] sm:$0xff]  ;;  %v31_v7 = vld [vmem:[%s993_s1 + $0x10] sm:$0xff] }
   0x3   :  { %39 = vperm.xlu0 %732, %v29_v2   ;;  %v94_v8 = vld [vmem:[%s992_s2 + $0x18] sm:$0xff]  ;;  %v93_v9 = vld [vmem:[%s992_s2 + $0x10] sm:$0xff]  ;;  %v34_v10 = vld [vmem:[%s993_s1 + $0x28] sm:$0xff] }
   0x4   :  { %v33_v11 = vld [vmem:[%s993_s1 + $0x20] sm:$0xff]  ;;  %v96_v12 = vld [vmem:[%s992_s2 + $0x28] sm:$0xff]  ;;  %v36_v14 = vld [vmem:[%s993_s1 + $0x38] sm:$0xff] }
   0x5   :  { %v95_v13 = vld [vmem:[%s992_s2 + $0x20] sm:$0xff]  ;;  %v35_v15 = vld [vmem:[%s993_s1 + $0x30] sm:$0xff]  ;;  %v98_v16 = vld [vmem:[%s992_s2 + $0x38] sm:$0xff] }
   0x6   :  { %106 = vperm.xlu1 %733, %v92_v4   ;;  %v97_v17 = vld [vmem:[%s992_s2 + $0x30] sm:$0xff]  ;;  %v172_v18 = vld [vmem:[%s995_s4 + $0x8] sm:$0xff]  ;;  %v171_v19 = vld [vmem:[%s995_s4] sm:$0xff] }
   0x7   :  { %44 = vperm.xlu0 %732, %v30_v5   ;;  %v174_v20 = vld [vmem:[%s995_s4 + $0x18] sm:$0xff]  ;;  %v173_v21 = vld [vmem:[%s995_s4 + $0x10] sm:$0xff]  ;;  %v155_v22 = vld [vmem:[%s996_s3] sm:$0xff] }
   0x8   :  { %v163_v23 = vld [vmem:[%s996_s3 + $0x40] sm:$0xff]  ;;  %v176_v24 = vld [vmem:[%s995_s4 + $0x28] sm:$0xff]  ;;  %683 = vmatprep.mubr.msk.f32.mxu0 %vm267_vm0, %v155_v22  ;;  %v480_v28 = vld [vmem:[%s997_s5 + $0x18] sm:$0xff] }
   0x9   :  { %v175_v25 = vld [vmem:[%s995_s4 + $0x20] sm:$0xff]  ;;  %695 = vmatprep.mubr.msk.f32.mxu1 %vm267_vm0, %v163_v23  ;;  %v478_v26 = vld [vmem:[%s997_s5 + $0x8] sm:$0xff]  ;;  %v479_v29 = vld [vmem:[%s997_s5 + $0x10] sm:$0xff] }
   0xa   :  { %54 = vperm.xlu1 %733, %v32_v6   ;;  %v477_v27 = vld [vmem:[%s997_s5] sm:$0xff]  ;;  %v177_v31 = vld [vmem:[%s995_s4 + $0x30] sm:$0xff]  ;;  %v482_v32 = vld [vmem:[%s997_s5 + $0x28] sm:$0xff] }
   0xb   :  { %49 = vperm.xlu0 %732, %v31_v7   ;;  %v481_v30 = vld [vmem:[%s997_s5 + $0x20] sm:$0xff]  ;;  %v178_v33 = vld [vmem:[%s995_s4 + $0x38] sm:$0xff]  ;;  %v483_v34 = vld [vmem:[%s997_s5 + $0x30] sm:$0xff] }
   0xc   :  { %v179_v35 = vld [vmem:[%s995_s4 + $0x40] sm:$0xff]  ;;  %v484_v36 = vld [vmem:[%s997_s5 + $0x38] sm:$0xff]  ;;  %v180_v37 = vld [vmem:[%s995_s4 + $0x48] sm:$0xff] }
   0xd   :  { %v485_v38 = vld [vmem:[%s997_s5 + $0x40] sm:$0xff]  ;;  %v181_v39 = vld [vmem:[%s995_s4 + $0x50] sm:$0xff]  ;;  %v486_v40 = vld [vmem:[%s997_s5 + $0x48] sm:$0xff] }
   0xe   :  { %116 = vperm.xlu1 %733, %v94_v8   ;;  %v182_v41 = vld [vmem:[%s995_s4 + $0x58] sm:$0xff]  ;;  %v487_v42 = vld [vmem:[%s997_s5 + $0x50] sm:$0xff]  ;;  %v183_v43 = vld [vmem:[%s995_s4 + $0x60] sm:$0xff] }
   0xf   :  { %111 = vperm.xlu0 %732, %v93_v9   ;;  %v488_v44 = vld [vmem:[%s997_s5 + $0x58] sm:$0xff]  ;;  %v184_v45 = vld [vmem:[%s995_s4 + $0x68] sm:$0xff]  ;;  %v489_v46 = vld [vmem:[%s997_s5 + $0x60] sm:$0xff] }
  0x10   :  { %v185_v47 = vld [vmem:[%s995_s4 + $0x70] sm:$0xff]  ;;  %v490_v48 = vld [vmem:[%s997_s5 + $0x68] sm:$0xff]  ;;  %v186_v49 = vld [vmem:[%s995_s4 + $0x78] sm:$0xff] }
  0x11   :  { %v492_v50 = vld [vmem:[%s997_s5 + $0x78] sm:$0xff]  ;;  %v491_v51 = vld [vmem:[%s997_s5 + $0x70] sm:$0xff]  ;;  %v610_v52 = vld [vmem:[#allocation2] sm:$0x1] }
  0x12   :  { %64 = vperm.xlu1 %733, %v34_v10   ;;  %v626_v53 = vld [vmem:[%s998_s0] ss:$0 sm:$0xff] }
  0x13   :  { %59 = vperm.xlu0 %732, %v33_v11  }
  0x16   :  { %126 = vperm.xlu1 %733, %v96_v12  }
  0x17   :  { %121 = vperm.xlu0 %732, %v95_v13  }
  0x1a   :  { %74 = vperm.xlu1 %733, %v36_v14  }
  0x1b   :  { %69 = vperm.xlu0 %732, %v35_v15  }
  0x1e   :  { %136 = vperm.xlu1 %733, %v98_v16  }
  0x1f   :  { %131 = vperm.xlu0 %732, %v97_v17  }
  0x22   :  { %194 = vperm.xlu1 %733, %v172_v18  }
  0x23   :  { %189 = vperm.xlu0 %732, %v171_v19  }
  0x26   :  { %204 = vperm.xlu1 %733, %v174_v20  }
  0x27   :  { %199 = vperm.xlu0 %732, %v173_v21  }
  0x2a   :  { %214 = vperm.xlu1 %733, %v176_v24  }
  0x2b   :  { %209 = vperm.xlu0 %732, %v175_v25  }
  0x2e   :  { %500 = vperm.xlu1 %733, %v478_v26  }
  0x2f   :  { %495 = vperm.xlu0 %732, %v477_v27  }
  0x32   :  { %510 = vperm.xlu1 %733, %v480_v28  }
  0x33   :  { %505 = vperm.xlu0 %732, %v479_v29  }
  0x36   :  { %515 = vperm.xlu1 %733, %v481_v30  }
  0x37   :  { %219 = vperm.xlu0 %732, %v177_v31  }
  0x3a   :  { %520 = vperm.xlu1 %733, %v482_v32  }
  0x3b   :  { %224 = vperm.xlu0 %732, %v178_v33  }
  0x3e   :  { %525 = vperm.xlu1 %733, %v483_v34   ;;  %v156_v34 = vld [vmem:[%s996_s3 + $0x8] sm:$0xff] }
  0x3f   :  { %229 = vperm.xlu0 %732, %v179_v35   ;;  %v164_v35 = vld [vmem:[%s996_s3 + $0x48] sm:$0xff] }
  0x42   :  { %530 = vperm.xlu1 %733, %v484_v36   ;;  %v157_v36 = vld [vmem:[%s996_s3 + $0x10] sm:$0xff] }
  0x43   :  { %234 = vperm.xlu0 %732, %v180_v37   ;;  %v165_v37 = vld [vmem:[%s996_s3 + $0x50] sm:$0xff] }
  0x46   :  { %535 = vperm.xlu1 %733, %v485_v38   ;;  %v158_v38 = vld [vmem:[%s996_s3 + $0x18] sm:$0xff] }
  0x47   :  { %239 = vperm.xlu0 %732, %v181_v39   ;;  %v166_v39 = vld [vmem:[%s996_s3 + $0x58] sm:$0xff] }
  0x4a   :  { %540 = vperm.xlu1 %733, %v486_v40   ;;  %v159_v40 = vld [vmem:[%s996_s3 + $0x20] sm:$0xff] }
  0x4b   :  { %244 = vperm.xlu0 %732, %v182_v41   ;;  %v167_v41 = vld [vmem:[%s996_s3 + $0x60] sm:$0xff] }
  0x4e   :  { %545 = vperm.xlu1 %733, %v487_v42   ;;  %v160_v42 = vld [vmem:[%s996_s3 + $0x28] sm:$0xff] }
  0x4f   :  { %249 = vperm.xlu0 %732, %v183_v43   ;;  %v168_v43 = vld [vmem:[%s996_s3 + $0x68] sm:$0xff] }
  0x52   :  { %550 = vperm.xlu1 %733, %v488_v44   ;;  %v161_v44 = vld [vmem:[%s996_s3 + $0x30] sm:$0xff] }
  0x53   :  { %254 = vperm.xlu0 %732, %v184_v45   ;;  %v169_v45 = vld [vmem:[%s996_s3 + $0x70] sm:$0xff] }
  0x56   :  { %555 = vperm.xlu1 %733, %v489_v46   ;;  %v162_v46 = vld [vmem:[%s996_s3 + $0x38] sm:$0xff] }
  0x57   :  { %259 = vperm.xlu0 %732, %v185_v47   ;;  %v170_v47 = vld [vmem:[%s996_s3 + $0x78] sm:$0xff] }
  0x5a   :  { %560 = vperm.xlu1 %733, %v490_v48  }
  0x5b   :  { %264 = vperm.xlu0 %732, %v186_v49  }
  0x5e   :  { %570 = vperm.xlu1 %733, %v492_v50  }
  0x5f   :  { %565 = vperm.xlu0 %732, %v491_v51  }
  0x63   :  { %613 = vperm.xlu0 %732, %v610_v52  }
  0x81   :  { %v102_v54 = vpop.permute.xlu1 %101 }
  0x82   :  { %v40_v55 = vpop.permute.xlu0 %39 }
  0x83   :  { %v83_v56 = vmul.f32 %v626_v53, %v40_v55 }
  0x85   :  { %v107_v57 = vpop.permute.xlu1 %106  ;;  %v139_v59 = vadd.f32 %v102_v54, %v83_v56 }
  0x86   :  { %v45_v58 = vpop.permute.xlu0 %44 }
  0x87   :  { %v84_v60 = vmul.f32 %v626_v53, %v45_v58  ;;  %v147_v0 = vmax.f32 %v139_v59, 0.0 }
  0x89   :  { %v140_v61 = vadd.f32 %v107_v57, %v84_v60  ;;  %v55_v62 = vpop.permute.xlu1 %54 }
  0x8a   :  { %v50_v63 = vpop.permute.xlu0 %49  ;;  %v86_v3 = vmul.f32 %v626_v53, %v55_v62 }
  0x8b   :  { %v148_v1 = vmax.f32 %v140_v61, 0.0  ;;  %v85_v4 = vmul.f32 %v626_v53, %v50_v63 }
  0x8d   :  { %v707_v2 = vpack.c.bf16 %v148_v1, %v147_v0  ;;  %v117_v5 = vpop.permute.xlu1 %116 }
  0x8e   :  { %v112_v6 = vpop.permute.xlu0 %111  ;;  %v142_v7 = vadd.f32 %v117_v5, %v86_v3 }
  0x8f   :  { %v141_v8 = vadd.f32 %v112_v6, %v85_v4  ;;  %708 = vmatprep.subr.bf16.mxu0 %v707_v2  ;;  %723 = vmatprep.subr.bf16.mxu1 %v707_v2 }
  0x90   :  { %710 = vmatpush3.bf16.msra.mxu0 %v707_v2  ;;  %727 = vmatpush3.bf16.msra.mxu1 %v707_v2  ;;  %v150_v9 = vmax.f32 %v142_v7, 0.0 }
  0x91   :  { %v149_v10 = vmax.f32 %v141_v8, 0.0  ;;  %v65_v11 = vpop.permute.xlu1 %64 }
  0x92   :  { %v60_v12 = vpop.permute.xlu0 %59  ;;  %v88_v14 = vmul.f32 %v626_v53, %v65_v11 }
  0x93   :  { %v711_v13 = vpack.c.bf16 %v150_v9, %v149_v10  ;;  %v87_v15 = vmul.f32 %v626_v53, %v60_v12 }
  0x95   :  { %712 = vmatprep.subr.bf16.mxu0 %v711_v13  ;;  %724 = vmatprep.subr.bf16.mxu1 %v711_v13  ;;  %v127_v16 = vpop.permute.xlu1 %126 }
  0x96   :  { %v122_v17 = vpop.permute.xlu0 %121  ;;  %714 = vmatpush3.bf16.msra.mxu0 %v711_v13  ;;  %728 = vmatpush3.bf16.msra.mxu1 %v711_v13  ;;  %v144_v18 = vadd.f32 %v127_v16, %v88_v14 }
  0x97   :  { %v143_v19 = vadd.f32 %v122_v17, %v87_v15 }
  0x98   :  { %v152_v20 = vmax.f32 %v144_v18, 0.0 }
  0x99   :  { %v151_v21 = vmax.f32 %v143_v19, 0.0  ;;  %v75_v22 = vpop.permute.xlu1 %74 }
  0x9a   :  { %v70_v23 = vpop.permute.xlu0 %69  ;;  %v90_v25 = vmul.f32 %v626_v53, %v75_v22 }
  0x9b   :  { %v715_v24 = vpack.c.bf16 %v152_v20, %v151_v21  ;;  %v89_v26 = vmul.f32 %v626_v53, %v70_v23 }
  0x9d   :  { %716 = vmatprep.subr.bf16.mxu0 %v715_v24  ;;  %725 = vmatprep.subr.bf16.mxu1 %v715_v24  ;;  %v137_v27 = vpop.permute.xlu1 %136 }
  0x9e   :  { %v132_v28 = vpop.permute.xlu0 %131  ;;  %718 = vmatpush3.bf16.msra.mxu0 %v715_v24  ;;  %729 = vmatpush3.bf16.msra.mxu1 %v715_v24  ;;  %v146_v29 = vadd.f32 %v137_v27, %v90_v25 }
  0x9f   :  { %v145_v30 = vadd.f32 %v132_v28, %v89_v26 }
  0xa0   :  { %v154_v31 = vmax.f32 %v146_v29, 0.0 }
  0xa1   :  { %v153_v32 = vmax.f32 %v145_v30, 0.0  ;;  %v195_v49 = vpop.permute.xlu1 %194 }
  0xa2   :  { %v190_v48 = vpop.permute.xlu0 %189 }
  0xa3   :  { %v719_v33 = vpack.c.bf16 %v154_v31, %v153_v32 }
  0xa5   :  { %720 = vmatprep.subr.bf16.mxu0 %v719_v33  ;;  %726 = vmatprep.subr.bf16.mxu1 %v719_v33  ;;  %v205_v51 = vpop.permute.xlu1 %204 }
  0xa6   :  { %722 = vmatpush3.bf16.msra.mxu0 %v719_v33  ;;  %730 = vmatpush3.bf16.msra.mxu1 %v719_v33  ;;  %v200_v50 = vpop.permute.xlu0 %199 }
  0xa9   :  { %684 = vmatmul.mubr.msk.f32.vlgmr.msra.gmra.mrb[0].mxu0 %vm267_vm0, %v156_v34  ;;  %696 = vmatmul.mubr.msk.f32.vlgmr.msra.gmra.mrb[0].mxu1 %vm267_vm0, %v164_v35  ;;  %v215_v53 = vpop.permute.xlu1 %214 }
  0xaa   :  { %686 = vmatprep.mubr.msk.f32.mxu0 %vm267_vm0, %v157_v36  ;;  %698 = vmatprep.mubr.msk.f32.mxu1 %vm267_vm0, %v165_v37  ;;  %v210_v52 = vpop.permute.xlu0 %209 }
  0xad   :  { %687 = vmatmul.mubr.msk.f32.gmra.mrb[2].mxu0 %vm267_vm0, %v158_v38  ;;  %699 = vmatmul.mubr.msk.f32.gmra.mrb[2].mxu1 %vm267_vm0, %v166_v39  ;;  %v501_v55 = vpop.permute.xlu1 %500 }
  0xae   :  { %689 = vmatprep.mubr.msk.f32.mxu0 %vm267_vm0, %v159_v40  ;;  %701 = vmatprep.mubr.msk.f32.mxu1 %vm267_vm0, %v167_v41  ;;  %v496_v54 = vpop.permute.xlu0 %495 }
  0xb1   :  { %690 = vmatmul.mubr.msk.f32.gmra.mrb[4].mxu0 %vm267_vm0, %v160_v42  ;;  %702 = vmatmul.mubr.msk.f32.gmra.mrb[4].mxu1 %vm267_vm0, %v168_v43  ;;  %v511_v57 = vpop.permute.xlu1 %510 }
  0xb2   :  { %692 = vmatprep.mubr.msk.f32.mxu0 %vm267_vm0, %v161_v44  ;;  %704 = vmatprep.mubr.msk.f32.mxu1 %vm267_vm0, %v169_v45  ;;  %v506_v56 = vpop.permute.xlu0 %505 }
  0xb5   :  { %693 = vmatmul.mubr.msk.f32.gmra.mrb[6].mxu0 %vm267_vm0, %v162_v46  ;;  %705 = vmatmul.mubr.msk.f32.gmra.mrb[6].mxu1 %vm267_vm0, %v170_v47  ;;  %v516_v59 = vpop.permute.xlu1 %515 }
  0xb6   :  { %v220_v58 = vpop.permute.xlu0 %219 }
  0xb9   :  { %v521_v61 = vpop.permute.xlu1 %520 }
  0xba   :  { %v225_v60 = vpop.permute.xlu0 %224 }
  0xbd   :  { %v526_v63 = vpop.permute.xlu1 %525 }
  0xbe   :  { %v230_v62 = vpop.permute.xlu0 %229 }
  0xc1   :  { %v531_v1 = vpop.permute.xlu1 %530 }
  0xc2   :  { %v235_v0 = vpop.permute.xlu0 %234 }
  0xc5   :  { %v536_v3 = vpop.permute.xlu1 %535 }
  0xc6   :  { %v240_v2 = vpop.permute.xlu0 %239 }
  0xc9   :  { %v541_v11 = vpop.permute.xlu1 %540 }
  0xca   :  { %v245_v4 = vpop.permute.xlu0 %244 }
  0xcd   :  { %v546_v33 = vpop.permute.xlu1 %545 }
  0xce   :  { %v250_v22 = vpop.permute.xlu0 %249 }
  0xd2   :  { %v255_v47 = vpop.permute.xlu0 %254 }
 0x17c   :  { %v685_v5 = vpop.f32.mrb[0].mxu0  ;;  %v697_v6 = vpop.f32.mrb[0].mxu1 }
 0x17d   :  { %v388_v7 = vadd.f32 %v685_v5, %v195_v49  ;;  %v382_v8 = vpop.f32.mrb[1].mxu0  ;;  %v422_v9 = vpop.f32.mrb[1].mxu1 }
 0x17e   :  { %v383_v10 = vadd.f32 %v382_v8, %v190_v48  ;;  %v423_v43 = vadd.f32 %v422_v9, %v230_v62  ;;  %v428_v48 = vadd.f32 %v697_v6, %v235_v0 }
 0x17f   :  { %v462_v12 = vmax.f32 %v388_v7, 0.0 }
 0x180   :  { %v461_v13 = vmax.f32 %v383_v10, 0.0  ;;  %v688_v14 = vpop.f32.mrb[2].mxu0  ;;  %v700_v15 = vpop.f32.mrb[2].mxu1  ;;  %v470_v5 = vmax.f32 %v428_v48, 0.0 }
 0x181   :  { %v574_v16 = vmul.f32 %v501_v55, %v462_v12  ;;  %v398_v17 = vadd.f32 %v688_v14, %v205_v51  ;;  %v392_v18 = vpop.f32.mrb[3].mxu0  ;;  %v432_v19 = vpop.f32.mrb[3].mxu1  ;;  %v438_v7 = vadd.f32 %v700_v15, %v245_v4 }
 0x182   :  { %v573_v20 = vmul.f32 %v496_v54, %v461_v13  ;;  %v393_v21 = vadd.f32 %v392_v18, %v200_v50  ;;  %v469_v54 = vmax.f32 %v423_v43, 0.0  ;;  %v433_v55 = vadd.f32 %v432_v19, %v240_v2  ;;  %v260_v10 = vpop.permute.xlu0 %259 }
 0x183   :  { %v464_v24 = vmax.f32 %v398_v17, 0.0  ;;  %v582_v0 = vmul.f32 %v541_v11, %v470_v5 }
 0x184   :  { %v589_v23 = vadd.f32 %v574_v16, %v573_v20  ;;  %v463_v25 = vmax.f32 %v393_v21, 0.0  ;;  %v691_v26 = vpop.f32.mrb[4].mxu0  ;;  %v703_v27 = vpop.f32.mrb[4].mxu1  ;;  %v581_v62 = vmul.f32 %v536_v3, %v469_v54 }
 0x185   :  { %v408_v28 = vadd.f32 %v691_v26, %v215_v53  ;;  %v402_v29 = vpop.f32.mrb[5].mxu0  ;;  %v442_v30 = vpop.f32.mrb[5].mxu1  ;;  %v576_v34 = vmul.f32 %v511_v57, %v464_v24  ;;  %v448_v6 = vadd.f32 %v703_v27, %v255_v47 }
 0x186   :  { %v575_v31 = vmul.f32 %v506_v56, %v463_v25  ;;  %v403_v32 = vadd.f32 %v402_v29, %v210_v52  ;;  %v551_v53 = vpop.permute.xlu1 %550  ;;  %v443_v9 = vadd.f32 %v442_v30, %v250_v22  ;;  %v616_v30 = vlaneseq }
 0x187   :  { %v466_v36 = vmax.f32 %v408_v28, 0.0  ;;  %v474_v19 = vmax.f32 %v448_v6, 0.0 }
 0x188   :  { %v590_v35 = vadd.f32 %v589_v23, %v575_v31  ;;  %v465_v37 = vmax.f32 %v403_v32, 0.0  ;;  %v694_v38 = vpop.f32.mrb[6].mxu0  ;;  %v706_v39 = vpop.f32.mrb[6].mxu1  ;;  %v473_v16 = vmax.f32 %v443_v9, 0.0 }
 0x189   :  { %v418_v40 = vadd.f32 %v694_v38, %v225_v60  ;;  %v412_v41 = vpop.f32.mrb[7].mxu0  ;;  %v452_v42 = vpop.f32.mrb[7].mxu1  ;;  %v578_v49 = vmul.f32 %v521_v61, %v466_v36  ;;  %v472_v61 = vmax.f32 %v438_v7, 0.0 }
 0x18a   :  { %v577_v44 = vmul.f32 %v516_v59, %v465_v37  ;;  %v591_v45 = vadd.f32 %v590_v35, %v576_v34  ;;  %v413_v46 = vadd.f32 %v412_v41, %v220_v58  ;;  %v471_v59 = vmax.f32 %v433_v55, 0.0  ;;  %v556_v12 = vpop.permute.xlu1 %555 }
 0x18b   :  { %v468_v51 = vmax.f32 %v418_v40, 0.0  ;;  %v453_v2 = vadd.f32 %v452_v42, %v260_v10  ;;  %v584_v18 = vmul.f32 %v551_v53, %v472_v61  ;;  %v585_v20 = vmul.f32 %v556_v12, %v473_v16 }
 0x18c   :  { %v592_v50 = vadd.f32 %v591_v45, %v577_v44  ;;  %v467_v52 = vmax.f32 %v413_v46, 0.0  ;;  %v583_v14 = vmul.f32 %v546_v33, %v471_v59  ;;  %v617_v33 = vshrl.u32 %v616_v30, 7 }
 0x18d   :  { %v580_v60 = vmul.f32 %v531_v1, %v468_v51  ;;  %v475_v3 = vmax.f32 %v453_v2, 0.0 }
 0x18e   :  { %v579_v56 = vmul.f32 %v526_v63, %v467_v52  ;;  %v593_v57 = vadd.f32 %v592_v50, %v578_v49  ;;  %v265_v63 = vpop.permute.xlu0 %264  ;;  %v561_v15 = vpop.permute.xlu1 %560  ;;  %v618_v36 = vsub.s32 0, %v617_v33 }
 0x18f   :  { %v458_v4 = vadd.f32 %v706_v39, %v265_v63  ;;  %v586_v22 = vmul.f32 %v561_v15, %v474_v19 }
 0x190   :  { %v594_v8 = vadd.f32 %v593_v57, %v579_v56 }
 0x191   :  { %v476_v23 = vmax.f32 %v458_v4, 0.0 }
 0x192   :  { %v595_v58 = vadd.f32 %v594_v8, %v580_v60  ;;  %v566_v11 = vpop.permute.xlu0 %565  ;;  %v571_v27 = vpop.permute.xlu1 %570 }
 0x193   :  { %v587_v25 = vmul.f32 %v566_v11, %v475_v3  ;;  %v588_v28 = vmul.f32 %v571_v27, %v476_v23 }
 0x194   :  { %v596_v13 = vadd.f32 %v595_v58, %v581_v62 }
 0x196   :  { %v597_v17 = vadd.f32 %v596_v13, %v582_v0  ;;  %v614_v38 = vpop.permute.xlu0 %613 }
 0x197   :  { %v619_v40 = vrot.slane %v614_v38, %v618_v36 }
 0x198   :  { %v598_v1 = vadd.f32 %v597_v17, %v583_v14 }
 0x19a   :  { %v599_v21 = vadd.f32 %v598_v1, %v584_v18 }
 0x19c   :  { %v600_v24 = vadd.f32 %v599_v21, %v585_v20 }
 0x19e   :  { %v601_v26 = vadd.f32 %v600_v24, %v586_v22 }
 0x1a0   :  { %v602_v29 = vadd.f32 %v601_v26, %v587_v25 }
 0x1a2   :  { %v603_v31 = vadd.f32 %v602_v29, %v588_v28 }
 0x1a4   :  { %v604_v32 = vrot.slane %v603_v31, 4 }
 0x1a6   :  { %v605_v34 = vadd.f32 %v604_v32, %v603_v31 }
 0x1a8   :  { %v606_v35 = vrot.slane %v605_v34, 2 }
 0x1aa   :  { %v607_v37 = vadd.f32 %v606_v35, %v605_v34 }
 0x1ac   :  { %v608_v39 = vrot.slane %v607_v37, 1 }
 0x1ae   :  { %v609_v41 = vadd.f32 %v608_v39, %v607_v37 }
 0x1b0   :  { %v620_v42 = vadd.f32 %v619_v40, %v609_v41 }
 0x1b2   :  { %621 = vst [vmem:[%s999_s7] sm:$0x1] %v620_v42 }

</bundles_post_ra>
